<compile_context>
chip_gen: v7x
topology: tpu7x:2x2x1
jax: 0.10.0
libtpu: 0.0.40
codegen_flags: <defaults>
</compile_context>

<pallas_src>
import jax
import jax.numpy as jnp
from jax import lax
from jax.experimental import pallas as pl
from jax.experimental.pallas import tpu as pltpu


# ---------------------------------------------------------------------------
# Single fused kernel: conv(3x3,pad=1) + bias + ReLU + 2x2 max-pool + flatten
#                      + Linear -> ReLU -> Linear (padded logits).
# ---------------------------------------------------------------------------
def convnet_kernel(xcol_ref, wct_ref, bc_ref, w1_ref, b1_ref, w2_ref, b2_ref,
                   out_ref, feat_ref):
    # xcol_ref: (4, Kp, N*P)  im2col patches, one slab per 2x2-pool offset
    # wct_ref : (Co, Kp)      conv weight, transposed, K zero-padded
    # bc_ref  : (Co, 1)       conv bias
    # w1_ref  : (F=Co*P, Hd)  first Linear (feature order already matches)
    # b1_ref  : (1, Hd)
    # w2_ref  : (Hd, 128)     final Linear, output dim zero-padded to 128 lanes
    # b2_ref  : (1, 128)
    # out_ref : (N, 128)      padded logits (lane-dense store)
    # feat_ref: (N, F)        VMEM scratch for the (Co,N*P) -> (N,Co*P) re-layout
    wct = wct_ref[...]

    # Conv for each pooling offset; 2x2 max-pool = 3 elementwise VPU maxes.
    conv = jnp.dot(wct, xcol_ref[0], preferred_element_type=jnp.float32)
    for t in range(1, 4):
        conv = jnp.maximum(
            conv, jnp.dot(wct, xcol_ref[t], preferred_element_type=jnp.float32))
    # Bias + ReLU commute with the max (bias is offset-independent, ReLU monotone).
    pooled = jnp.maximum(conv + bc_ref[...], 0.0)          # (Co, N*P), lane-dense

    co_dim, npos = pooled.shape
    n_batch = out_ref.shape[0]
    p = npos // n_batch
    # Re-layout (Co, N*P) -> (N, Co*P): exactly PyTorch's (C, H, W) flatten order.
    for n in range(n_batch):
        for c in range(co_dim):
            feat_ref[n:n + 1, c * p:(c + 1) * p] = pooled[c:c + 1, n * p:(n + 1) * p]
    feat = feat_ref[...]                                   # (N, F)

    h = jnp.dot(feat, w1_ref[...], preferred_element_type=jnp.float32) + b1_ref[...]
    h = jnp.maximum(h, 0.0)                                # ReLU
    out_ref[...] = (jnp.dot(h, w2_ref[...], preferred_element_type=jnp.float32)
                    + b2_ref[...])


def convnet_forward(x_nchw, params):
    """Pallas forward pass matching the PyTorch ConvNet (NCHW input)."""
    wc, bc, w1, b1, w2, b2 = params
    N, C, H, W = x_nchw.shape
    Co = wc.shape[0]
    assert H % 2 == 0 and W % 2 == 0, "2x2 max-pool requires even spatial dims"
    HO, WO = H // 2, W // 2
    P = HO * WO
    Hd, F = w1.shape
    k = w2.shape[0]
    assert F == Co * P

    K = 9 * C
    Kp = ((K + 7) // 8) * 8          # sublane-align the conv contraction dim
    LANES = 128                      # lane-dense padded logits width
    assert k <= LANES

    # ---- trace-time glue (pure data movement, runs in XLA outside the kernel) ----
    # Per-pool-offset im2col: xcol4[t, k, n*P + p] with k = (kh*3+kw)*C + ci,
    # p = ho*WO + wo, t enumerating the 2x2 pooling offsets (dh, dw).
    x_nhwc = jnp.transpose(x_nchw, (0, 2, 3, 1))
    x_pad = jnp.pad(x_nhwc, ((0, 0), (1, 1), (1, 1), (0, 0)))
    offs = []
    for dh in range(2):
        for dw in range(2):
            patches = [x_pad[:, dh + kh:dh + kh + 2 * HO:2,
                              dw + kw:dw + kw + 2 * WO:2, :]
                       for kh in range(3) for kw in range(3)]
            col = jnp.concatenate(patches, axis=-1).reshape(N, P, K)      # (N,P,9C)
            offs.append(jnp.transpose(col, (2, 0, 1)).reshape(K, N * P))  # (9C,N*P)
    xcol4 = jnp.pad(jnp.stack(offs), ((0, 0), (0, Kp - K), (0, 0)))       # (4,Kp,N*P)

    # Conv weight OIHW -> (Co, kh, kw, ci) -> (Co, 9C), matching im2col order.
    wct = jnp.pad(jnp.transpose(wc, (0, 2, 3, 1)).reshape(Co, K),
                  ((0, 0), (0, Kp - K)))
    # Final layer padded to a full 128-lane output block (sliced after the call).
    w2p = jnp.pad(w2.T, ((0, 0), (0, LANES - k)))
    b2p = jnp.pad(b2, (0, LANES - k)).reshape(1, LANES)

    out = pl.pallas_call(
        convnet_kernel,
        out_shape=jax.ShapeDtypeStruct((N, LANES), jnp.float32),
        in_specs=[pl.BlockSpec(memory_space=pltpu.MemorySpace.VMEM)] * 7,
        out_specs=pl.BlockSpec(memory_space=pltpu.MemorySpace.VMEM),
        scratch_shapes=[pltpu.VMEM((N, F), jnp.float32)],
    )(xcol4, wct, bc.reshape(Co, 1), w1.T, b1.reshape(1, Hd), w2p, b2p)
    return out[:, :k]


def reference_forward(x_nchw, params):
    """Pure-JAX reference reproducing the PyTorch NCHW forward."""
    wc, bc, w1, b1, w2, b2 = params
    y = lax.conv_general_dilated(
        x_nchw, wc, window_strides=(1, 1), padding=((1, 1), (1, 1)),
        dimension_numbers=("NCHW", "OIHW", "NCHW")) + bc[None, :, None, None]
    y = jnp.maximum(y, 0.0)
    N, Co, H, W = y.shape
    y = y.reshape(N, Co, H // 2, 2, W // 2, 2).max(axis=(3, 5))
    f = y.reshape(N, -1)
    h = jnp.maximum(f @ w1.T + b1, 0.0)
    return h @ w2.T + b2


if __name__ == "__main__":
    # Small shapes implied by the config: batch=2, channels=4, spatial=16, k=3.
    N, C, H, W = 2, 4, 16, 16
    Co, Hd, k = 8, 32, 3
    F = Co * (H // 2) * (W // 2)   # 512

    key = jax.random.PRNGKey(0)
    kx, k0, k1, k2, k3, k4, k5 = jax.random.split(key, 7)
    x = jax.random.normal(kx, (N, C, H, W), jnp.float32)

    # Deterministic parameter init (PyTorch layouts: OIHW conv, (out,in) linear).
    wc = jax.random.normal(k0, (Co, C, 3, 3), jnp.float32) * 0.1
    bc = jax.random.normal(k1, (Co,), jnp.float32) * 0.1
    w1 = jax.random.normal(k2, (Hd, F), jnp.float32) * 0.05
    b1 = jax.random.normal(k3, (Hd,), jnp.float32) * 0.1
    w2 = jax.random.normal(k4, (k, Hd), jnp.float32) * 0.1
    b2 = jax.random.normal(k5, (k,), jnp.float32) * 0.1
    params = (wc, bc, w1, b1, w2, b2)

    out = jax.jit(convnet_forward)(x, params)
    out = jax.block_until_ready(out)

    ref = reference_forward(x, params)
    assert out.shape == (N, k)
    assert jnp.allclose(out, ref, rtol=1e-4, atol=1e-4), (out, ref)
    print("KERNEL_OK")
</pallas_src>

<mosaic_0001>
module attributes {stable_mosaic.version = 11 : i64} {
  func.func @convnet_kernel(%arg0: memref<4x40x128xf32, #tpu.memory_space<vmem>>, %arg1: memref<8x40xf32, #tpu.memory_space<vmem>>, %arg2: memref<8x1xf32, #tpu.memory_space<vmem>>, %arg3: memref<512x32xf32, #tpu.memory_space<vmem>>, %arg4: memref<1x32xf32, #tpu.memory_space<vmem>>, %arg5: memref<32x128xf32, #tpu.memory_space<vmem>>, %arg6: memref<1x128xf32, #tpu.memory_space<vmem>>, %arg7: memref<2x128xf32, #tpu.memory_space<vmem>>, %arg8: memref<2x512xf32, #tpu.memory_space<vmem>>) attributes {dimension_semantics = [], scalar_prefetch = 0 : i64, scratch_operands = 1 : i64, tpu.core_type = #tpu.core_type<tc>} {
    %c0 = arith.constant 0 : index
    %c0_0 = arith.constant 0 : index
    %0 = vector.load %arg1[%c0, %c0_0] : memref<8x40xf32, #tpu.memory_space<vmem>>, vector<8x40xf32>
    %c0_1 = arith.constant 0 : index
    %c0_2 = arith.constant 0 : index
    %c0_3 = arith.constant 0 : index
    %1 = vector.load %arg0[%c0_1, %c0_2, %c0_3] : memref<4x40x128xf32, #tpu.memory_space<vmem>>, vector<1x40x128xf32>
    %2 = vector.shape_cast %1 : vector<1x40x128xf32> to vector<40x128xf32>
    %cst = arith.constant dense<0.000000e+00> : vector<8x128xf32>
    %3 = tpu.matmul %0, %2, %cst {dimension_numbers = #tpu.dot_dimension_numbers<[1], [0], [0], [1], [0, 0, 1, 1], [], []>} : vector<8x40xf32>, vector<40x128xf32>, vector<8x128xf32> -> vector<8x128xf32>
    %c1 = arith.constant 1 : index
    %c0_4 = arith.constant 0 : index
    %c0_5 = arith.constant 0 : index
    %4 = vector.load %arg0[%c1, %c0_4, %c0_5] : memref<4x40x128xf32, #tpu.memory_space<vmem>>, vector<1x40x128xf32>
    %5 = vector.shape_cast %4 : vector<1x40x128xf32> to vector<40x128xf32>
    %cst_6 = arith.constant dense<0.000000e+00> : vector<8x128xf32>
    %6 = tpu.matmul %0, %5, %cst_6 {dimension_numbers = #tpu.dot_dimension_numbers<[1], [0], [0], [1], [0, 0, 1, 1], [], []>} : vector<8x40xf32>, vector<40x128xf32>, vector<8x128xf32> -> vector<8x128xf32>
    %7 = arith.maximumf %3, %6 : vector<8x128xf32>
    %c2 = arith.constant 2 : index
    %c0_7 = arith.constant 0 : index
    %c0_8 = arith.constant 0 : index
    %8 = vector.load %arg0[%c2, %c0_7, %c0_8] : memref<4x40x128xf32, #tpu.memory_space<vmem>>, vector<1x40x128xf32>
    %9 = vector.shape_cast %8 : vector<1x40x128xf32> to vector<40x128xf32>
    %cst_9 = arith.constant dense<0.000000e+00> : vector<8x128xf32>
    %10 = tpu.matmul %0, %9, %cst_9 {dimension_numbers = #tpu.dot_dimension_numbers<[1], [0], [0], [1], [0, 0, 1, 1], [], []>} : vector<8x40xf32>, vector<40x128xf32>, vector<8x128xf32> -> vector<8x128xf32>
    %11 = arith.maximumf %7, %10 : vector<8x128xf32>
    %c3 = arith.constant 3 : index
    %c0_10 = arith.constant 0 : index
    %c0_11 = arith.constant 0 : index
    %12 = vector.load %arg0[%c3, %c0_10, %c0_11] : memref<4x40x128xf32, #tpu.memory_space<vmem>>, vector<1x40x128xf32>
    %13 = vector.shape_cast %12 : vector<1x40x128xf32> to vector<40x128xf32>
    %cst_12 = arith.constant dense<0.000000e+00> : vector<8x128xf32>
    %14 = tpu.matmul %0, %13, %cst_12 {dimension_numbers = #tpu.dot_dimension_numbers<[1], [0], [0], [1], [0, 0, 1, 1], [], []>} : vector<8x40xf32>, vector<40x128xf32>, vector<8x128xf32> -> vector<8x128xf32>
    %15 = arith.maximumf %11, %14 : vector<8x128xf32>
    %c0_13 = arith.constant 0 : index
    %c0_14 = arith.constant 0 : index
    %16 = vector.load %arg2[%c0_13, %c0_14] : memref<8x1xf32, #tpu.memory_space<vmem>>, vector<8x1xf32>
    %17 = vector.broadcast %16 : vector<8x1xf32> to vector<8x128xf32>
    %18 = arith.addf %15, %17 : vector<8x128xf32>
    %cst_15 = arith.constant 0.000000e+00 : f32
    %19 = vector.broadcast %cst_15 : f32 to vector<8x128xf32>
    %20 = arith.maximumf %18, %19 : vector<8x128xf32>
    %21 = vector.extract_strided_slice %20 {offsets = [0, 0], sizes = [1, 64], strides = [1, 1]} : vector<8x128xf32> to vector<1x64xf32>
    %c0_16 = arith.constant 0 : index
    %c0_17 = arith.constant 0 : index
    %22 = vector.load %arg8[%c0_16, %c0_17] : memref<2x512xf32, #tpu.memory_space<vmem>>, vector<1x64xf32>
    tpu.vector_store %arg8[%c0_16, %c0_17], %21 {strides = array<i32>} : memref<2x512xf32, #tpu.memory_space<vmem>>, vector<1x64xf32>,
    %23 = vector.extract_strided_slice %20 {offsets = [1, 0], sizes = [1, 64], strides = [1, 1]} : vector<8x128xf32> to vector<1x64xf32>
    %c0_18 = arith.constant 0 : index
    %c64 = arith.constant 64 : index
    %24 = vector.load %arg8[%c0_18, %c64] : memref<2x512xf32, #tpu.memory_space<vmem>>, vector<1x64xf32>
    tpu.vector_store %arg8[%c0_18, %c64], %23 {strides = array<i32>} : memref<2x512xf32, #tpu.memory_space<vmem>>, vector<1x64xf32>,
    %25 = vector.extract_strided_slice %20 {offsets = [2, 0], sizes = [1, 64], strides = [1, 1]} : vector<8x128xf32> to vector<1x64xf32>
    %c0_19 = arith.constant 0 : index
    %c128 = arith.constant 128 : index
    %26 = vector.load %arg8[%c0_19, %c128] : memref<2x512xf32, #tpu.memory_space<vmem>>, vector<1x64xf32>
    tpu.vector_store %arg8[%c0_19, %c128], %25 {strides = array<i32>} : memref<2x512xf32, #tpu.memory_space<vmem>>, vector<1x64xf32>,
    %27 = vector.extract_strided_slice %20 {offsets = [3, 0], sizes = [1, 64], strides = [1, 1]} : vector<8x128xf32> to vector<1x64xf32>
    %c0_20 = arith.constant 0 : index
    %c192 = arith.constant 192 : index
    %28 = vector.load %arg8[%c0_20, %c192] : memref<2x512xf32, #tpu.memory_space<vmem>>, vector<1x64xf32>
    tpu.vector_store %arg8[%c0_20, %c192], %27 {strides = array<i32>} : memref<2x512xf32, #tpu.memory_space<vmem>>, vector<1x64xf32>,
    %29 = vector.extract_strided_slice %20 {offsets = [4, 0], sizes = [1, 64], strides = [1, 1]} : vector<8x128xf32> to vector<1x64xf32>
    %c0_21 = arith.constant 0 : index
    %c256 = arith.constant 256 : index
    %30 = vector.load %arg8[%c0_21, %c256] : memref<2x512xf32, #tpu.memory_space<vmem>>, vector<1x64xf32>
    tpu.vector_store %arg8[%c0_21, %c256], %29 {strides = array<i32>} : memref<2x512xf32, #tpu.memory_space<vmem>>, vector<1x64xf32>,
    %31 = vector.extract_strided_slice %20 {offsets = [5, 0], sizes = [1, 64], strides = [1, 1]} : vector<8x128xf32> to vector<1x64xf32>
    %c0_22 = arith.constant 0 : index
    %c320 = arith.constant 320 : index
    %32 = vector.load %arg8[%c0_22, %c320] : memref<2x512xf32, #tpu.memory_space<vmem>>, vector<1x64xf32>
    tpu.vector_store %arg8[%c0_22, %c320], %31 {strides = array<i32>} : memref<2x512xf32, #tpu.memory_space<vmem>>, vector<1x64xf32>,
    %33 = vector.extract_strided_slice %20 {offsets = [6, 0], sizes = [1, 64], strides = [1, 1]} : vector<8x128xf32> to vector<1x64xf32>
    %c0_23 = arith.constant 0 : index
    %c384 = arith.constant 384 : index
    %34 = vector.load %arg8[%c0_23, %c384] : memref<2x512xf32, #tpu.memory_space<vmem>>, vector<1x64xf32>
    tpu.vector_store %arg8[%c0_23, %c384], %33 {strides = array<i32>} : memref<2x512xf32, #tpu.memory_space<vmem>>, vector<1x64xf32>,
    %35 = vector.extract_strided_slice %20 {offsets = [7, 0], sizes = [1, 64], strides = [1, 1]} : vector<8x128xf32> to vector<1x64xf32>
    %c0_24 = arith.constant 0 : index
    %c448 = arith.constant 448 : index
    %36 = vector.load %arg8[%c0_24, %c448] : memref<2x512xf32, #tpu.memory_space<vmem>>, vector<1x64xf32>
    tpu.vector_store %arg8[%c0_24, %c448], %35 {strides = array<i32>} : memref<2x512xf32, #tpu.memory_space<vmem>>, vector<1x64xf32>,
    %37 = vector.extract_strided_slice %20 {offsets = [0, 64], sizes = [1, 64], strides = [1, 1]} : vector<8x128xf32> to vector<1x64xf32>
    %c1_25 = arith.constant 1 : index
    %c0_26 = arith.constant 0 : index
    %38 = vector.load %arg8[%c1_25, %c0_26] : memref<2x512xf32, #tpu.memory_space<vmem>>, vector<1x64xf32>
    tpu.vector_store %arg8[%c1_25, %c0_26], %37 {strides = array<i32>} : memref<2x512xf32, #tpu.memory_space<vmem>>, vector<1x64xf32>,
    %39 = vector.extract_strided_slice %20 {offsets = [1, 64], sizes = [1, 64], strides = [1, 1]} : vector<8x128xf32> to vector<1x64xf32>
    %c1_27 = arith.constant 1 : index
    %c64_28 = arith.constant 64 : index
    %40 = vector.load %arg8[%c1_27, %c64_28] : memref<2x512xf32, #tpu.memory_space<vmem>>, vector<1x64xf32>
    tpu.vector_store %arg8[%c1_27, %c64_28], %39 {strides = array<i32>} : memref<2x512xf32, #tpu.memory_space<vmem>>, vector<1x64xf32>,
    %41 = vector.extract_strided_slice %20 {offsets = [2, 64], sizes = [1, 64], strides = [1, 1]} : vector<8x128xf32> to vector<1x64xf32>
    %c1_29 = arith.constant 1 : index
    %c128_30 = arith.constant 128 : index
    %42 = vector.load %arg8[%c1_29, %c128_30] : memref<2x512xf32, #tpu.memory_space<vmem>>, vector<1x64xf32>
    tpu.vector_store %arg8[%c1_29, %c128_30], %41 {strides = array<i32>} : memref<2x512xf32, #tpu.memory_space<vmem>>, vector<1x64xf32>,
    %43 = vector.extract_strided_slice %20 {offsets = [3, 64], sizes = [1, 64], strides = [1, 1]} : vector<8x128xf32> to vector<1x64xf32>
    %c1_31 = arith.constant 1 : index
    %c192_32 = arith.constant 192 : index
    %44 = vector.load %arg8[%c1_31, %c192_32] : memref<2x512xf32, #tpu.memory_space<vmem>>, vector<1x64xf32>
    tpu.vector_store %arg8[%c1_31, %c192_32], %43 {strides = array<i32>} : memref<2x512xf32, #tpu.memory_space<vmem>>, vector<1x64xf32>,
    %45 = vector.extract_strided_slice %20 {offsets = [4, 64], sizes = [1, 64], strides = [1, 1]} : vector<8x128xf32> to vector<1x64xf32>
    %c1_33 = arith.constant 1 : index
    %c256_34 = arith.constant 256 : index
    %46 = vector.load %arg8[%c1_33, %c256_34] : memref<2x512xf32, #tpu.memory_space<vmem>>, vector<1x64xf32>
    tpu.vector_store %arg8[%c1_33, %c256_34], %45 {strides = array<i32>} : memref<2x512xf32, #tpu.memory_space<vmem>>, vector<1x64xf32>,
    %47 = vector.extract_strided_slice %20 {offsets = [5, 64], sizes = [1, 64], strides = [1, 1]} : vector<8x128xf32> to vector<1x64xf32>
    %c1_35 = arith.constant 1 : index
    %c320_36 = arith.constant 320 : index
    %48 = vector.load %arg8[%c1_35, %c320_36] : memref<2x512xf32, #tpu.memory_space<vmem>>, vector<1x64xf32>
    tpu.vector_store %arg8[%c1_35, %c320_36], %47 {strides = array<i32>} : memref<2x512xf32, #tpu.memory_space<vmem>>, vector<1x64xf32>,
    %49 = vector.extract_strided_slice %20 {offsets = [6, 64], sizes = [1, 64], strides = [1, 1]} : vector<8x128xf32> to vector<1x64xf32>
    %c1_37 = arith.constant 1 : index
    %c384_38 = arith.constant 384 : index
    %50 = vector.load %arg8[%c1_37, %c384_38] : memref<2x512xf32, #tpu.memory_space<vmem>>, vector<1x64xf32>
    tpu.vector_store %arg8[%c1_37, %c384_38], %49 {strides = array<i32>} : memref<2x512xf32, #tpu.memory_space<vmem>>, vector<1x64xf32>,
    %51 = vector.extract_strided_slice %20 {offsets = [7, 64], sizes = [1, 64], strides = [1, 1]} : vector<8x128xf32> to vector<1x64xf32>
    %c1_39 = arith.constant 1 : index
    %c448_40 = arith.constant 448 : index
    %52 = vector.load %arg8[%c1_39, %c448_40] : memref<2x512xf32, #tpu.memory_space<vmem>>, vector<1x64xf32>
    tpu.vector_store %arg8[%c1_39, %c448_40], %51 {strides = array<i32>} : memref<2x512xf32, #tpu.memory_space<vmem>>, vector<1x64xf32>,
    %c0_41 = arith.constant 0 : index
    %c0_42 = arith.constant 0 : index
    %53 = vector.load %arg8[%c0_41, %c0_42] : memref<2x512xf32, #tpu.memory_space<vmem>>, vector<2x512xf32>
    %c0_43 = arith.constant 0 : index
    %c0_44 = arith.constant 0 : index
    %54 = vector.load %arg3[%c0_43, %c0_44] : memref<512x32xf32, #tpu.memory_space<vmem>>, vector<512x32xf32>
    %cst_45 = arith.constant dense<0.000000e+00> : vector<2x32xf32>
    %55 = tpu.matmul %53, %54, %cst_45 {dimension_numbers = #tpu.dot_dimension_numbers<[1], [0], [0], [1], [0, 0, 1, 1], [], []>} : vector<2x512xf32>, vector<512x32xf32>, vector<2x32xf32> -> vector<2x32xf32>
    %c0_46 = arith.constant 0 : index
    %c0_47 = arith.constant 0 : index
    %56 = vector.load %arg4[%c0_46, %c0_47] : memref<1x32xf32, #tpu.memory_space<vmem>>, vector<1x32xf32>
    %57 = vector.broadcast %56 : vector<1x32xf32> to vector<2x32xf32>
    %58 = arith.addf %55, %57 : vector<2x32xf32>
    %cst_48 = arith.constant 0.000000e+00 : f32
    %59 = vector.broadcast %cst_48 : f32 to vector<2x32xf32>
    %60 = arith.maximumf %58, %59 : vector<2x32xf32>
    %c0_49 = arith.constant 0 : index
    %c0_50 = arith.constant 0 : index
    %61 = vector.load %arg5[%c0_49, %c0_50] : memref<32x128xf32, #tpu.memory_space<vmem>>, vector<32x128xf32>
    %cst_51 = arith.constant dense<0.000000e+00> : vector<2x128xf32>
    %62 = tpu.matmul %60, %61, %cst_51 {dimension_numbers = #tpu.dot_dimension_numbers<[1], [0], [0], [1], [0, 0, 1, 1], [], []>} : vector<2x32xf32>, vector<32x128xf32>, vector<2x128xf32> -> vector<2x128xf32>
    %c0_52 = arith.constant 0 : index
    %c0_53 = arith.constant 0 : index
    %63 = vector.load %arg6[%c0_52, %c0_53] : memref<1x128xf32, #tpu.memory_space<vmem>>, vector<1x128xf32>
    %64 = vector.broadcast %63 : vector<1x128xf32> to vector<2x128xf32>
    %65 = arith.addf %62, %64 : vector<2x128xf32>
    %c0_54 = arith.constant 0 : index
    %c0_55 = arith.constant 0 : index
    %66 = vector.load %arg7[%c0_54, %c0_55] : memref<2x128xf32, #tpu.memory_space<vmem>>, vector<2x128xf32>
    tpu.vector_store %arg7[%c0_54, %c0_55], %65 {strides = array<i32>} : memref<2x128xf32, #tpu.memory_space<vmem>>, vector<2x128xf32>,
    return
  }
}

</mosaic_0001>

<bundles_post_ra>
// kernel: convnet_forward.1
= control target key start
LH: loop header
LB: loop body
LE: loop exit
PB: predicated region body
PF: predicated region fallthrough
CT: control target
= control target key end

     0   :  { %v1067_v3 = vmov 0.0|0.0   ;;  %vm1068_vm0 = vmmov 0   ;;  %v1069_v11 = vmov 0.0   ;;  %v1070_v13 = vmov 0   ;;  %s1473_s0 = inlined_call_operand.vmem [shape: f32[4,40,128], index: 0, kind: input, shape index: {}]   ;;  %s1474_s1 = inlined_call_operand.vmem [shape: f32[8,40], index: 1, kind: input, shape index: {}]   ;;  %s1475_s2 = inlined_call_operand.vmem [shape: f32[8,1], index: 2, kind: input, shape index: {}]   ;;  %s1476_s3 = inlined_call_operand.vmem [shape: f32[512,32], index: 3, kind: input, shape index: {}]   ;;  %s1477_s4 = inlined_call_operand.vmem [shape: f32[1,32], index: 4, kind: input, shape index: {}]   ;;  %s1478_s5 = inlined_call_operand.vmem [shape: f32[32,128], index: 5, kind: input, shape index: {}]   ;;  %s1479_s6 = inlined_call_operand.vmem [shape: f32[1,128], index: 6, kind: input, shape index: {}]   ;;  %s1480_s7 = inlined_call_operand.hbm [shape: f32[2,128], index: 7, kind: output, shape index: {}]  }
   0x1   :  { %v28_v0 = vld [vmem:[%s1473_s0] sm:$0xff]  ;;  %v29_v1 = vld [vmem:[%s1473_s0 + $0x8] sm:$0xff]  ;;  %940 = vmatprep.subr.bf16.mxu0 %v1067_v3  ;;  %946 = vmatprep.subr.bf16.mxu1 %v1067_v3  ;;  %v758_v5 = vld [vmem:[%s1473_s0 + $0x30] sm:$0xff] }
   0x2   :  { %v757_v2 = vld [vmem:[%s1473_s0 + $0x28] sm:$0xff]  ;;  %v941_v4 = vpack.c.bf16 %v29_v1, %v28_v0  ;;  %v30_v6 = vld [vmem:[%s1473_s0 + $0x10] sm:$0xff]  ;;  %v31_v7 = vld [vmem:[%s1473_s0 + $0x18] sm:$0xff]  ;;  %887 = vmatprep.mubr.msk.f32.mxu0 %vm1068_vm0, %v1069_v11  ;;  %900 = vmatprep.mubr.msk.f32.mxu1 %vm1068_vm0, %v1069_v11 }
   0x3   :  { %v947_v8 = vpack.c.bf16 %v758_v5, %v757_v2  ;;  %v759_v9 = vld [vmem:[%s1473_s0 + $0x38] sm:$0xff]  ;;  %v760_v10 = vld [vmem:[%s1473_s0 + $0x40] sm:$0xff]  ;;  %v944_v12 = vpack.c.bf16 %v31_v7, %v30_v6  ;;  %1041 = vset.pattern.permute.xlu0 %v1070_v13  ;;  %v763_v15 = vld [vmem:[%s1473_s0 + $0x50] sm:$0xff] }
   0x4   :  { %942 = vmatpush3.bf16.msra.mxu0 %v941_v4  ;;  %v950_v14 = vpack.c.bf16 %v760_v10, %v759_v9  ;;  %v764_v16 = vld [vmem:[%s1473_s0 + $0x58] sm:$0xff]  ;;  %v338_v17 = vld [vmem:[%s1475_s2] sm:$0xff] }
   0x5   :  { %948 = vmatpush3.bf16.msra.mxu1 %v947_v8  ;;  %943 = vmatprep.subr.bf16.mxu0 %v1067_v3 }
   0x6   :  { %949 = vmatprep.subr.bf16.mxu1 %v1067_v3 }
   0x8   :  { %945 = vmatpush3.bf16.msra.mxu0 %v944_v12 }
   0x9   :  { %12 = vsyncpa [#allocation4], 0  ;;  %951 = vmatpush3.bf16.msra.mxu1 %v950_v14  ;;  %885 = vmatprep.subr.mxu0 %v1069_v11  ;;  %v32_v18 = vld [vmem:[%s1473_s0 + $0x20] sm:$0xff]  ;;  %v769_v19 = vld [vmem:[%s1473_s0 + $0x78] sm:$0xff]  ;;  %vm33_vm1 = vcmask 326656   ;;  %v953_v23 = vpack.c.bf16 %v764_v16, %v763_v15  ;;  %v352_v60 = vlaneseq  ;;  %vm346_vm2 = vcmask 516096  }
   0xa   :  { %v770_v20 = vld [vmem:[%s1473_s0 + $0x80] sm:$0xff]  ;;  %898 = vmatprep.subr.mxu1 %v1069_v11  ;;  %v761_v22 = vld [vmem:[%s1473_s0 + $0x48] sm:$0xff]  ;;  %341 = vperm.xlu0 %1041, %v338_v17   ;;  %v772_v28 = vld [vmem:[%s1473_s0 + $0x90] sm:$0xff]  ;;  %v1071_v58 = vmov 1983009808   ;;  %vm361_vm3 = vcmask 1040896  }
   0xb   :  { %v27_v21 = vld [vmem:[%s1474_s1] sm:$0xff]  ;;  %v959_v24 = vpack.c.bf16 %v770_v20, %v769_v19  ;;  %v766_v26 = vld [vmem:[%s1473_s0 + $0x68] sm:$0xff]  ;;  %v767_v31 = vld [vmem:[%s1473_s0 + $0x70] sm:$0xff]  ;;  %v350_v59 = vunpack.c.l.s4 %v1071_v58  ;;  %v353_v16 = vshrl.u32 %v352_v60, 7  ;;  %vm667_vm4 = vcmask 261120  }
   0xc   :  { %886 = vmatpush3.msra.mxu0 %v32_v18  ;;  %v765_v25 = vld [vmem:[%s1473_s0 + $0x60] sm:$0xff]  ;;  %v771_v27 = vld [vmem:[%s1473_s0 + $0x88] sm:$0xff]  ;;  %v773_v32 = vld [vmem:[%s1473_s0 + $0x98] sm:$0xff]  ;;  %s1072_s0 = smov 64  }
   0xd   :  { %888 = vmatmul.mubr.msk.f32.vlgmr.msra.gmra.mrb[0].mxu0 %vm33_vm1, %v27_v21  ;;  %899 = vmatpush3.msra.mxu1 %v761_v22  ;;  %v956_v29 = vpack.c.bf16 %v766_v26, %v765_v25  ;;  %v962_v30 = vpack.c.bf16 %v772_v28, %v771_v27  ;;  %v438_v33 = vld [vmem:[%s1476_s3 + $0x80] sm:$0xff]  ;;  %v439_v34 = vld [vmem:[%s1476_s3 + $0x88] sm:$0xff]  ;;  %v440_v44 = vld [vmem:[%s1476_s3 + $0x90] sm:$0xff]  ;;  %v351_v15 = vunpack.c.0.s8 %v350_v59 }
   0xe   :  { %952 = vmatprep.subr.bf16.mxu0 %v1067_v3  ;;  %901 = vmatmul.mubr.msk.f32.vlgmr.msra.gmra.mrb[0].mxu1 %vm33_vm1, %v27_v21  ;;  %v422_v35 = vld [vmem:[%s1476_s3] sm:$0xff]  ;;  %v964_v36 = vpack.c.bf16 %v439_v34, %v438_v33  ;;  %v423_v37 = vld [vmem:[%s1476_s3 + $0x8] sm:$0xff]  ;;  %v441_v46 = vld [vmem:[%s1476_s3 + $0x98] sm:$0xff] }
   0xf   :  { %954 = vmatpush3.bf16.msra.mxu0 %v953_v23  ;;  %958 = vmatprep.subr.bf16.mxu1 %v1067_v3  ;;  %v470_v38 = vld [vmem:[%s1476_s3 + $0x180] sm:$0xff]  ;;  %v471_v39 = vld [vmem:[%s1476_s3 + $0x188] sm:$0xff]  ;;  %v966_v40 = vpack.c.bf16 %v423_v37, %v422_v35  ;;  %v968_v47 = vpack.c.bf16 %v441_v46, %v440_v44  ;;  %v424_v53 = vld [vmem:[%s1476_s3 + $0x10] sm:$0xff] }
  0x10   :  { %960 = vmatpush3.bf16.msra.mxu1 %v959_v24  ;;  %955 = vmatprep.subr.bf16.mxu0 %v1067_v3  ;;  %v996_v41 = vpack.c.bf16 %v471_v39, %v470_v38  ;;  %v454_v42 = vld [vmem:[%s1476_s3 + $0x100] sm:$0xff]  ;;  %v455_v43 = vld [vmem:[%s1476_s3 + $0x108] sm:$0xff]  ;;  %v425_v54 = vld [vmem:[%s1476_s3 + $0x18] sm:$0xff] }
  0x11   :  { %961 = vmatprep.subr.bf16.mxu1 %v1067_v3  ;;  %913 = vmatprep.mubr.msk.f32.mxu0 %vm1068_vm0, %v1069_v11  ;;  %v998_v45 = vpack.c.bf16 %v455_v43, %v454_v42  ;;  %v970_v55 = vpack.c.bf16 %v425_v54, %v424_v53  ;;  %v472_v56 = vld [vmem:[%s1476_s3 + $0x190] sm:$0xff]  ;;  %v473_v57 = vld [vmem:[%s1476_s3 + $0x198] sm:$0xff]  ;;  %v442_v1 = vld [vmem:[%s1476_s3 + $0xa0] sm:$0xff] }
  0x12   :  { %926 = vmatprep.mubr.msk.f32.mxu1 %vm1068_vm0, %v1069_v11  ;;  %v1000_v61 = vpack.c.bf16 %v473_v57, %v472_v56  ;;  %v456_v62 = vld [vmem:[%s1476_s3 + $0x110] sm:$0xff]  ;;  %v457_v63 = vld [vmem:[%s1476_s3 + $0x118] sm:$0xff]  ;;  %v443_v2 = vld [vmem:[%s1476_s3 + $0xa8] sm:$0xff] }
  0x13   :  { %957 = vmatpush3.bf16.msra.mxu0 %v956_v29  ;;  %v1002_v0 = vpack.c.bf16 %v457_v63, %v456_v62  ;;  %v972_v4 = vpack.c.bf16 %v443_v2, %v442_v1  ;;  %v426_v5 = vld [vmem:[%s1476_s3 + $0x20] sm:$0xff]  ;;  %v427_v6 = vld [vmem:[%s1476_s3 + $0x28] sm:$0xff]  ;;  %v444_v23 = vld [vmem:[%s1476_s3 + $0xb0] sm:$0xff] }
  0x14   :  { %963 = vmatpush3.bf16.msra.mxu1 %v962_v30  ;;  %911 = vmatprep.subr.mxu0 %v1069_v11  ;;  %v974_v8 = vpack.c.bf16 %v427_v6, %v426_v5  ;;  %v474_v9 = vld [vmem:[%s1476_s3 + $0x1a0] sm:$0xff]  ;;  %v475_v10 = vld [vmem:[%s1476_s3 + $0x1a8] sm:$0xff]  ;;  %v445_v24 = vld [vmem:[%s1476_s3 + $0xb8] sm:$0xff] }
  0x15   :  { %924 = vmatprep.subr.mxu1 %v1069_v11  ;;  %v1004_v17 = vpack.c.bf16 %v475_v10, %v474_v9  ;;  %v458_v18 = vld [vmem:[%s1476_s3 + $0x120] sm:$0xff]  ;;  %v459_v19 = vld [vmem:[%s1476_s3 + $0x128] sm:$0xff]  ;;  %v976_v26 = vpack.c.bf16 %v445_v24, %v444_v23  ;;  %v428_v27 = vld [vmem:[%s1476_s3 + $0x30] sm:$0xff] }
  0x16   :  { %v1006_v22 = vpack.c.bf16 %v459_v19, %v458_v18  ;;  %v429_v28 = vld [vmem:[%s1476_s3 + $0x38] sm:$0xff]  ;;  %v476_v30 = vld [vmem:[%s1476_s3 + $0x1b0] sm:$0xff]  ;;  %v446_v38 = vld [vmem:[%s1476_s3 + $0xc0] sm:$0xff] }
  0x17   :  { %912 = vmatpush3.msra.mxu0 %v767_v31  ;;  %v978_v29 = vpack.c.bf16 %v429_v28, %v428_v27  ;;  %v477_v31 = vld [vmem:[%s1476_s3 + $0x1b8] sm:$0xff]  ;;  %v460_v35 = vld [vmem:[%s1476_s3 + $0x130] sm:$0xff]  ;;  %v447_v39 = vld [vmem:[%s1476_s3 + $0xc8] sm:$0xff] }
  0x18   :  { %914 = vmatmul.mubr.msk.f32.vlgmr.msra.gmra.mrb[2].mxu0 %vm33_vm1, %v27_v21  ;;  %925 = vmatpush3.msra.mxu1 %v773_v32  ;;  %v1294_v32 = vsub.s32 %v351_v15, %v353_v16  ;;  %v1008_v34 = vpack.c.bf16 %v477_v31, %v476_v30  ;;  %v430_v42 = vld [vmem:[%s1476_s3 + $0x40] sm:$0xff]  ;;  %v431_v43 = vld [vmem:[%s1476_s3 + $0x48] sm:$0xff]  ;;  %v448_v53 = vld [vmem:[%s1476_s3 + $0xd0] sm:$0xff] }
  0x19   :  { %927 = vmatmul.mubr.msk.f32.vlgmr.msra.gmra.mrb[2].mxu1 %vm33_vm1, %v27_v21  ;;  %965 = vmatprep.subr.bf16.mxu0 %v964_v36  ;;  %v461_v36 = vld [vmem:[%s1476_s3 + $0x138] sm:$0xff]  ;;  %v982_v44 = vpack.c.bf16 %v431_v43, %v430_v42  ;;  %v479_v46 = vld [vmem:[%s1476_s3 + $0x1c8] sm:$0xff]  ;;  %v432_v58 = vld [vmem:[%s1476_s3 + $0x50] sm:$0xff] }
  0x1a   :  { %967 = vmatpush3.bf16.msra.mxu0 %v966_v40  ;;  %997 = vmatprep.subr.bf16.mxu1 %v996_v41  ;;  %v1010_v37 = vpack.c.bf16 %v461_v36, %v460_v35  ;;  %v980_v41 = vpack.c.bf16 %v447_v39, %v446_v38  ;;  %v449_v54 = vld [vmem:[%s1476_s3 + $0xd8] sm:$0xff]  ;;  %v464_v63 = vld [vmem:[%s1476_s3 + $0x150] sm:$0xff]  ;;  %v451_v5 = vld [vmem:[%s1476_s3 + $0xe8] sm:$0xff] }
  0x1b   :  { %999 = vmatpush3.bf16.msra.mxu1 %v998_v45  ;;  %969 = vmatprep.subr.bf16.mxu0 %v968_v47  ;;  %v478_v45 = vld [vmem:[%s1476_s3 + $0x1c0] sm:$0xff]  ;;  %v984_v57 = vpack.c.bf16 %v449_v54, %v448_v53  ;;  %v433_v59 = vld [vmem:[%s1476_s3 + $0x58] sm:$0xff]  ;;  %v435_v10 = vld [vmem:[%s1476_s3 + $0x68] sm:$0xff] }
  0x1c   :  { %1001 = vmatprep.subr.bf16.mxu1 %v1000_v61  ;;  %v986_v60 = vpack.c.bf16 %v433_v59, %v432_v58  ;;  %v480_v61 = vld [vmem:[%s1476_s3 + $0x1d0] sm:$0xff]  ;;  %v481_v62 = vld [vmem:[%s1476_s3 + $0x1d8] sm:$0xff]  ;;  %v434_v9 = vld [vmem:[%s1476_s3 + $0x60] sm:$0xff] }
  0x1d   :  { %v465_v2 = vld [vmem:[%s1476_s3 + $0x158] sm:$0xff]  ;;  %v1016_v6 = vpack.c.bf16 %v481_v62, %v480_v61  ;;  %v483_v15 = vld [vmem:[%s1476_s3 + $0x1e8] sm:$0xff]  ;;  %v466_v16 = vld [vmem:[%s1476_s3 + $0x160] sm:$0xff] }
  0x1e   :  { %971 = vmatpush3.bf16.msra.mxu0 %v970_v55  ;;  %v452_v19 = vld [vmem:[%s1476_s3 + $0xf0] sm:$0xff]  ;;  %v485_v28 = vld [vmem:[%s1476_s3 + $0x1f8] sm:$0xff]  ;;  %v656_v53 = vld [vmem:[%s1478_s5] sm:$0xff] }
  0x1f   :  { %1003 = vmatpush3.bf16.msra.mxu1 %v1002_v0  ;;  %973 = vmatprep.subr.bf16.mxu0 %v972_v4  ;;  %v450_v4 = vld [vmem:[%s1476_s3 + $0xe0] sm:$0xff]  ;;  %v484_v27 = vld [vmem:[%s1476_s3 + $0x1f0] sm:$0xff]  ;;  %v469_v36 = vld [vmem:[%s1476_s3 + $0x178] sm:$0xff] }
  0x20   :  { %1005 = vmatprep.subr.bf16.mxu1 %v1004_v17  ;;  %v467_v17 = vld [vmem:[%s1476_s3 + $0x168] sm:$0xff]  ;;  %v1024_v30 = vpack.c.bf16 %v485_v28, %v484_v27  ;;  %v468_v35 = vld [vmem:[%s1476_s3 + $0x170] sm:$0xff]  ;;  %v775_v58 = vld [vmem:[%s1477_s4] ss:$0 sm:$0xff] }
  0x21   :  { %v1022_v24 = vpack.c.bf16 %v467_v17, %v466_v16  ;;  %v657_v54 = vld [vmem:[%s1478_s5 + $0x8] sm:$0xff] }
  0x22   :  { %975 = vmatpush3.bf16.msra.mxu0 %v974_v8  ;;  %v988_v8 = vpack.c.bf16 %v451_v5, %v450_v4 }
  0x23   :  { %1007 = vmatpush3.bf16.msra.mxu1 %v1006_v22  ;;  %977 = vmatprep.subr.bf16.mxu0 %v976_v26  ;;  %v437_v26 = vld [vmem:[%s1476_s3 + $0x78] sm:$0xff] }
  0x24   :  { %1009 = vmatprep.subr.bf16.mxu1 %v1008_v34 }
  0x26   :  { %979 = vmatpush3.bf16.msra.mxu0 %v978_v29 }
  0x27   :  { %1011 = vmatpush3.bf16.msra.mxu1 %v1010_v37  ;;  %981 = vmatprep.subr.bf16.mxu0 %v980_v41  ;;  %v1026_v37 = vpack.c.bf16 %v469_v36, %v468_v35 }
  0x2a   :  { %983 = vmatpush3.bf16.msra.mxu0 %v982_v44 }
  0x2b   :  { %985 = vmatprep.subr.bf16.mxu0 %v984_v57 }
  0x2e   :  { %987 = vmatpush3.bf16.msra.mxu0 %v986_v60 }
  0x2f   :  { %989 = vmatprep.subr.bf16.mxu0 %v988_v8 }
  0x89   :  { %v342_v21 = vpop.permute.xlu0 %341 }
  0xe0   :  { %v103_v48 = vpop.f32.mrb[0].mxu0 }
  0xe1   :  { %v889_v49 = vpop.f32.mrb[1].mxu0  ;;  %v179_v50 = vpop.f32.mrb[0].mxu1 }
  0xe2   :  { %v183_v51 = vmax.f32 %v103_v48, %v179_v50  ;;  %v902_v52 = vpop.f32.mrb[1].mxu1  ;;  %v1012_v49 = vpack.c.bf16 %v479_v46, %v478_v45  ;;  %v462_v50 = vld [vmem:[%s1476_s3 + $0x140] sm:$0xff] }
  0xe4   :  { %1013 = vmatprep.subr.bf16.mxu1 %v1012_v49 }
  0xeb   :  { %v256_v7 = vpop.f32.mrb[2].mxu0 }
  0xec   :  { %v260_v12 = vmax.f32 %v183_v51, %v256_v7  ;;  %v915_v13 = vpop.f32.mrb[3].mxu0  ;;  %v333_v14 = vpop.f32.mrb[2].mxu1  ;;  %v463_v51 = vld [vmem:[%s1476_s3 + $0x148] sm:$0xff]  ;;  %v1018_v7 = vpack.c.bf16 %v465_v2, %v464_v63  ;;  %v776_v2 = vld [vmem:[%s1479_s6] ss:$0 sm:$0xff] }
  0xed   :  { %v928_v20 = vpop.f32.mrb[3].mxu1  ;;  %v1014_v52 = vpack.c.bf16 %v463_v51, %v462_v50 }
  0xee   :  { %v337_v25 = vmax.f32 %v260_v12, %v333_v14  ;;  %v482_v12 = vld [vmem:[%s1476_s3 + $0x1e0] sm:$0xff]  ;;  %v990_v14 = vpack.c.bf16 %v435_v10, %v434_v9  ;;  %v453_v20 = vld [vmem:[%s1476_s3 + $0xf8] sm:$0xff] }
  0xef   :  { %1015 = vmatpush3.bf16.msra.mxu1 %v1014_v52  ;;  %v1020_v18 = vpack.c.bf16 %v483_v15, %v482_v12 }
  0xf0   :  { %v344_v33 = vadd.f32 %v342_v21, %v337_v25  ;;  %1017 = vmatprep.subr.bf16.mxu1 %v1016_v6  ;;  %v436_v21 = vld [vmem:[%s1476_s3 + $0x70] sm:$0xff]  ;;  %v992_v25 = vpack.c.bf16 %v453_v20, %v452_v19  ;;  %991 = vmatpush3.bf16.msra.mxu0 %v990_v14 }
  0xf1   :  { %v994_v29 = vpack.c.bf16 %v437_v26, %v436_v21 }
  0xf2   :  { %v345_v40 = vmax.f32 %v344_v33, 0.0  ;;  %993 = vmatprep.subr.bf16.mxu0 %v992_v25 }
  0xf3   :  { %1019 = vmatpush3.bf16.msra.mxu1 %v1018_v7 }
  0xf4   :  { %v372_v47 = vcombine.high %v345_v40, %v345_v40  ;;  %v1321_v48 = vrot.slane %v345_v40, %v1294_v32  ;;  %347 = vst.msk [vmem:[#allocation2] sm:$0x1] %vm346_vm2, %v345_v40  ;;  %1021 = vmatprep.subr.bf16.mxu1 %v1020_v18  ;;  %995 = vmatpush3.bf16.msra.mxu0 %v994_v29 }
  0xf5   :  { %1028 = vmatprep.subr.bf16.mxu0 %v1067_v3 }
  0xf6   :  { %v1337_v55 = vrot.slane %v372_v47, %v1294_v32  ;;  %397 = vrot.lane.b32.xlu0 %v1321_v48, %s1072_s0  ;;  %v363_v56 = vcombine.high %v1321_v48, %v1321_v48  ;;  %v356_v13 = vrot.slane %v1321_v48, 7 }
  0xf7   :  { %1023 = vmatpush3.bf16.msra.mxu1 %v1022_v24 }
  0xf8   :  { %403 = vrot.lane.b32.xlu1 %v363_v56, %s1072_s0  ;;  %v388_v0 = vcombine.high %v1337_v55, %v1337_v55  ;;  %v366_v1 = vrot.slane %v363_v56, 7  ;;  %365 = vst.msk [vmem:[#allocation2 + $0x2] sm:$0x1] %vm346_vm2, %v363_v56  ;;  %381 = vst.msk [vmem:[#allocation2 + $0x4] sm:$0x1] %vm346_vm2, %v1337_v55  ;;  %v357_v31 = vrot.slane %v356_v13, 2  ;;  %1025 = vmatprep.subr.bf16.mxu1 %v1024_v30 }
  0xf9   :  { %v382_v33 = vrot.slane %v1337_v55, 7 }
  0xfa   :  { %415 = vrot.lane.b32.xlu0 %v388_v0, %s1072_s0  ;;  %390 = vst.msk [vmem:[#allocation2 + $0x6] sm:$0x1] %vm346_vm2, %v388_v0  ;;  %v367_v22 = vrot.slane %v366_v1, 2  ;;  %v391_v23 = vrot.slane %v388_v0, 7 }
  0xfb   :  { %v383_v38 = vrot.slane %v382_v33, 2  ;;  %1027 = vmatpush3.bf16.msra.mxu1 %v1026_v37 }
  0xfc   :  { %409 = vrot.lane.b32.xlu1 %v1337_v55, %s1072_s0  ;;  %v392_v34 = vrot.slane %v391_v23, 2  ;;  %v1029_v55 = vpack.c.bf16 %v657_v54, %v656_v53 }
  0xfe   :  { %368 = vrot.lane.b32.xlu0 %v367_v22, %s1072_s0 }
 0x100   :  { %358 = vrot.lane.b32.xlu1 %v357_v31, %s1072_s0 }
 0x102   :  { %393 = vrot.lane.b32.xlu0 %v392_v34, %s1072_s0 }
 0x104   :  { %384 = vrot.lane.b32.xlu1 %v383_v38, %s1072_s0 }
 0x168   :  { %v398_v39 = vpop.permute.xlu0 %397 }
 0x169   :  { %400 = vst.msk [vmem:[#allocation2 + $0x1] sm:$0x1] %vm346_vm2, %v398_v39 }
 0x16a   :  { %402 = vst.msk [vmem:[#allocation2 + $0x1] sm:$0x1] %vm361_vm3, %v357_v31  ;;  %v404_v40 = vpop.permute.xlu1 %403 }
 0x16b   :  { %406 = vst.msk [vmem:[#allocation2 + $0x3] sm:$0x1] %vm346_vm2, %v404_v40 }
 0x16c   :  { %408 = vst.msk [vmem:[#allocation2 + $0x3] sm:$0x1] %vm361_vm3, %v367_v22  ;;  %v416_v41 = vpop.permute.xlu0 %415 }
 0x16d   :  { %418 = vst.msk [vmem:[#allocation2 + $0x7] sm:$0x1] %vm346_vm2, %v416_v41 }
 0x16e   :  { %420 = vst.msk [vmem:[#allocation2 + $0x7] sm:$0x1] %vm361_vm3, %v392_v34  ;;  %v410_v42 = vpop.permute.xlu1 %409 }
 0x16f   :  { %412 = vst.msk [vmem:[#allocation2 + $0x5] sm:$0x1] %vm346_vm2, %v410_v42 }
 0x170   :  { %414 = vst.msk [vmem:[#allocation2 + $0x5] sm:$0x1] %vm361_vm3, %v383_v38  ;;  %v369_v43 = vpop.permute.xlu0 %368 }
 0x171   :  { %371 = vst.msk [vmem:[#allocation2 + $0x2] sm:$0x1] %vm361_vm3, %v369_v43 }
 0x172   :  { %v359_v44 = vpop.permute.xlu1 %358 }
 0x173   :  { %362 = vst.msk [vmem:[#allocation2] sm:$0x1] %vm361_vm3, %v359_v44 }
 0x174   :  { %v394_v45 = vpop.permute.xlu0 %393 }
 0x175   :  { %396 = vst.msk [vmem:[#allocation2 + $0x6] sm:$0x1] %vm361_vm3, %v394_v45 }
 0x176   :  { %v385_v46 = vpop.permute.xlu1 %384 }
 0x177   :  { %387 = vst.msk [vmem:[#allocation2 + $0x4] sm:$0x1] %vm361_vm3, %v385_v46 }
 0x17e   :  { %v421_v47 = vld [vmem:[#allocation2] sm:$0xff] }
 0x17f   :  { %v501_v48 = vrot.slane %v421_v47, %v1294_v32  ;;  %v494_v49 = vcombine.high %v421_v47, %v421_v47 }
 0x181   :  { %v509_v50 = vcombine.high %v501_v48, %v501_v48  ;;  %v508_v51 = vrot.slane %v494_v49, %v1294_v32  ;;  %v658_v32 = vld [vmem:[%s1478_s5 + $0x10] sm:$0xff] }
 0x183   :  { %579 = vmatprep.mubr.f32.mxu0 %v509_v50  ;;  %v510_v52 = vcombine.high %v508_v51, %v508_v51 }
 0x184   :  { %580 = vmatmul.mubr.f32.vlgmr.msra.gmra.mrb[4].mxu0 %v501_v48 }
 0x185   :  { %649 = vmatprep.mubr.f32.mxu1 %v510_v52  ;;  %937 = vmatprep.mubr.msk.f32.mxu0 %vm1068_vm0, %v1069_v11  ;;  %v659_v11 = vld [vmem:[%s1478_s5 + $0x18] sm:$0xff]  ;;  %s1073_s5 = smov [#allocation3]  }
 0x186   :  { %650 = vmatmul.mubr.f32.vlgmr.msra.gmra.mrb[4].mxu1 %v508_v51  ;;  %1030 = vmatpush3.bf16.msra.mxu0 %v1029_v55  ;;  %v1032_v56 = vpack.c.bf16 %v659_v11, %v658_v32  ;;  %s748_s2 = sshll.u32 %s1073_s5, 4  ;;  %s749_s2 = int_to_ptr.vmem [resolvable:$true] %s748_s2 }
 0x187   :  { %1031 = vmatprep.subr.bf16.mxu0 %v1067_v3  ;;  %s1043_s4 = scalar_lea.vmem %s749_s2, 32  ;;  %p1048_p1 = scmp.lt.s32.totalorder %s749_s2, %s749_s2 }
 0x188   :  { %p1044_p0 = scmp.ne.s32.totalorder %s749_s2, %s1043_s4  ;;  %p1049_p2 = scmp.lt.s32.totalorder %s1043_s4, %s1043_s4 }
 0x18a   :  { %1033 = vmatpush3.bf16.msra.mxu0 %v1032_v56  ;;  %p1050_p3 = por %p1049_p2, %p1048_p1 }
 0x18c   :  { %p1051_p4 = pnand %p1050_p3, %p1044_p0 }
 0x257   :  { %v834_v57 = vpop.f32.mrb[4].mxu0 }
 0x258   :  { %v835_v59 = vpop.f32.mrb[5].mxu0 }
 0x259   :  { %v836_v60 = vadd.f32 %v835_v59, %v834_v57  ;;  %v869_v61 = vpop.f32.mrb[4].mxu1 }
 0x25a   :  { %v870_v62 = vpop.f32.mrb[5].mxu1 }
 0x25b   :  { %v582_v3 = vadd.f32 %v836_v60, %v775_v58  ;;  %v871_v63 = vadd.f32 %v870_v62, %v869_v61 }
 0x25d   :  { %v652_v0 = vadd.f32 %v871_v63, %v582_v3 }
 0x25f   :  { %v655_v1 = vmax.f32 %v652_v0, 0.0 }
 0x261   :  { %938 = vmatmul.mubr.msk.f32.vlgmr.msra.gmra.mrb[6].mxu0 %vm667_vm4, %v655_v1 }
 0x334   :  { %v737_v4 = vpop.f32.mrb[6].mxu0 }
 0x335   :  { %v738_v5 = vadd.f32 %v776_v2, %v737_v4  ;;  %v939_v6 = vpop.f32.mrb[7].mxu0 }
 0x337   :  { %741 = vst [vmem:[#allocation3] sm:$0x3] %v738_v5 }
 0x338   :  { %1054 = shalt.err (!%p1051_p4)
}
 0x339   :  { %s1055_s9 = scalar_lea.hbm %s1480_s7, 32 }
 0x33a   :  { %p1056_p5 = scmp.ne.s32.totalorder %s1480_s7, %s1055_s9  ;;  %p1059_p6 = scmp.lt.u32.totalorder %s1055_s9, %s1480_s7 }
 0x33c   :  { %p1061_p7 = pnand %p1059_p6, %p1056_p5 }
 0x33e   :  { %1064 = shalt.err (!%p1061_p7)
}
 0x33f   :  { %751 = dma.vmem_to_hbm [thread:$0]  %s749_s2, 32, %s1480_s7, [#allocation4]  }
 0x340   :  { %1065 = dma.done.wait [#allocation4], 32  }
 0x341   :  { %1066 = vsyncadd [#allocation4], 4294967264 }
 0x342   :  { %755 = vsyncpa [#allocation4], 1 }

</bundles_post_ra>
